<compile_context>
chip_gen: v7x
topology: tpu7x:2x2x1
jax: 0.10.0
libtpu: 0.0.40
codegen_flags: <defaults>
</compile_context>

<pallas_src>
import jax
import jax.numpy as jnp
from jax.experimental import pallas as pl
from jax.experimental.pallas import tpu as pltpu

# ---- model dimensions (consistent with INN(in_features=16, out_features=8)) ----
D = 16            # in_features
OUT = 8           # out_features
HIDDEN = 32       # coupling-network hidden width (coupling_network_layers=[32,32,32])
H2 = 2 * HIDDEN   # fused (block-diagonal) hidden width
SA = D // 2       # split_size_A
SB = D - SA       # split_size_B
B = 16            # batch

# ---- packed-weight row offsets (static; bias rows padded to 8-row slots) ----
# 64-lane-wide pack: [W0 (D,H2) | W1 (H2,H2) | W2 (H2,H2) | b0 | b1 | b2]
OFF_W0 = 0
OFF_W1 = OFF_W0 + D
OFF_W2 = OFF_W1 + H2
OFF_B0 = OFF_W2 + H2
OFF_B1 = OFF_B0 + 8
OFF_B2 = OFF_B1 + 8
ROWS_64 = OFF_B2 + 8          # 168

# 16-lane-wide pack: [Q1 (D,D) | Q2 (D,D) | WS (H2,D) | WT (H2,D) | bS | bT]
OFF_Q1 = 0
OFF_Q2 = OFF_Q1 + D
OFF_WS = OFF_Q2 + D
OFF_WT = OFF_WS + H2
OFF_BS = OFF_WT + H2
OFF_BT = OFF_BS + 8
ROWS_16 = OFF_BT + 8          # 176


# ----------------------------- Pallas kernel ---------------------------------
def inn_kernel(x_ref, w64_ref, w16_ref, out_ref):
    x = x_ref[...]                                      # (B, D) f32

    # unpack (static, sublane-aligned, full-lane-width slices)
    Q1 = w16_ref[OFF_Q1:OFF_Q1 + D, :]
    Q2 = w16_ref[OFF_Q2:OFF_Q2 + D, :]
    WS = w16_ref[OFF_WS:OFF_WS + H2, :]
    WT = w16_ref[OFF_WT:OFF_WT + H2, :]
    bS = w16_ref[OFF_BS:OFF_BS + 1, :]
    bT = w16_ref[OFF_BT:OFF_BT + 1, :]

    W0 = w64_ref[OFF_W0:OFF_W0 + D, :]
    W1 = w64_ref[OFF_W1:OFF_W1 + H2, :]
    W2 = w64_ref[OFF_W2:OFF_W2 + H2, :]
    b0 = w64_ref[OFF_B0:OFF_B0 + 1, :]
    b1 = w64_ref[OFF_B1:OFF_B1 + 1, :]
    b2 = w64_ref[OFF_B2:OFF_B2 + 1, :]

    # RandomPermute #1:  X @ Q1  (x1 = [Xa | Xb])
    x1 = jnp.dot(x, Q1, preferred_element_type=jnp.float32)

    # Fused coupling networks: block-diagonal weights run CNa and CNb together.
    # Dropout(0.5) == identity (eval semantics).
    h = jnp.maximum(jnp.dot(x1, W0, preferred_element_type=jnp.float32) + b0, 0.0)
    h = jnp.maximum(jnp.dot(h, W1, preferred_element_type=jnp.float32) + b1, 0.0)
    h = jnp.maximum(jnp.dot(h, W2, preferred_element_type=jnp.float32) + b2, 0.0)

    # S/T heads are pre-swapped host-side: S = [logSb | logSa], T = [Tb | Ta],
    # so the two-way affine update is a plain elementwise op (no lane splits).
    S = jnp.tanh(jnp.dot(h, WS, preferred_element_type=jnp.float32) + bS)
    T = jnp.dot(h, WT, preferred_element_type=jnp.float32) + bT

    z = x1 * jnp.exp(S) + T                              # = [Za | Zb]
    logdet = jnp.sum(S, axis=-1, keepdims=True)          # sum(logSa) + sum(logSb)

    # RandomPermute #2:  Z @ Q2
    xo = jnp.dot(z, Q2, preferred_element_type=jnp.float32)

    # sigmoid on the first OUT columns, identity on the rest (lane-masked, no slice)
    col = jax.lax.broadcasted_iota(jnp.int32, xo.shape, 1)
    yz = jnp.where(col < OUT, jax.nn.sigmoid(xo), xo)

    # single merged output: [:, :D] = (y | z), [:, D] = logdet
    out_ref[:, :D] = yz
    out_ref[:, D:] = logdet


# --------------------------- host-side weight fusion ---------------------------
def _block_diag(wa, wb):
    ra, ca = wa.shape
    rb, cb = wb.shape
    out = jnp.zeros((ra + rb, ca + cb), jnp.float32)
    out = out.at[:ra, :ca].set(wa)
    out = out.at[ra:, ca:].set(wb)
    return out


def _pad_rows(a, rows):
    return jnp.zeros((rows, a.shape[1]), jnp.float32).at[:a.shape[0], :].set(a)


def pack_params(q1, q2, a_params, b_params):
    w0a, b0a, w1a, b1a, w2a, b2a, wSa, bSa, wTa, bTa = a_params
    w0b, b0b, w1b, b1b, w2b, b2b, wSb, bSb, wTb, bTb = b_params

    W0 = _block_diag(w0a, w0b)                 # (D, H2)   [xa|xb] -> [ha|hb]
    W1 = _block_diag(w1a, w1b)                 # (H2, H2)
    W2 = _block_diag(w2a, w2b)                 # (H2, H2)
    B0 = jnp.concatenate([b0a, b0b], axis=1)   # (1, H2)
    B1 = jnp.concatenate([b1a, b1b], axis=1)
    B2 = jnp.concatenate([b2a, b2b], axis=1)

    # Swapped heads: output columns [0:SA] = logSb/Tb (from hb), [SA:D] = logSa/Ta
    # (from ha), so x1 * exp(S) + T directly yields [Za | Zb].
    WS = jnp.zeros((H2, D), jnp.float32)
    WS = WS.at[HIDDEN:, :SA].set(wSb)
    WS = WS.at[:HIDDEN, SA:].set(wSa)
    BS = jnp.concatenate([bSb, bSa], axis=1)   # (1, D)

    WT = jnp.zeros((H2, D), jnp.float32)
    WT = WT.at[HIDDEN:, :SA].set(wTb)
    WT = WT.at[:HIDDEN, SA:].set(wTa)
    BT = jnp.concatenate([bTb, bTa], axis=1)   # (1, D)

    w64 = jnp.concatenate(
        [W0, W1, W2, _pad_rows(B0, 8), _pad_rows(B1, 8), _pad_rows(B2, 8)], axis=0)
    w16 = jnp.concatenate(
        [q1, q2, WS, WT, _pad_rows(BS, 8), _pad_rows(BT, 8)], axis=0)
    assert w64.shape == (ROWS_64, H2) and w16.shape == (ROWS_16, D)
    return w64, w16


# ------------------------------- wrapper --------------------------------------
def inn_forward(x, q1, q2, a_params, b_params):
    w64, w16 = pack_params(q1, q2, a_params, b_params)
    out = pl.pallas_call(
        inn_kernel,
        out_shape=jax.ShapeDtypeStruct((x.shape[0], D + 1), jnp.float32),
        in_specs=[pl.BlockSpec(memory_space=pltpu.MemorySpace.VMEM)] * 3,
        out_specs=pl.BlockSpec(memory_space=pltpu.MemorySpace.VMEM),
    )(x, w64, w16)
    return out[:, :OUT], out[:, OUT:D], out[:, D]


# --------------------------- pure-JAX reference --------------------------------
def inn_reference(x, q1, q2, a_params, b_params):
    def net(h, p):
        w0, b0, w1, b1, w2, b2, wS, bS, wT, bT = p
        h = jnp.maximum(h @ w0 + b0, 0.0)
        h = jnp.maximum(h @ w1 + b1, 0.0)
        h = jnp.maximum(h @ w2 + b2, 0.0)
        return jnp.tanh(h @ wS + bS), h @ wT + bT

    x = x @ q1
    xa, xb = x[:, :SA], x[:, SA:]
    logSa, Ta = net(xa, a_params)
    logSb, Tb = net(xb, b_params)
    za = xa * jnp.exp(logSb) + Tb
    zb = xb * jnp.exp(logSa) + Ta
    logdet = logSa.sum(-1) + logSb.sum(-1)
    x = jnp.concatenate([za, zb], axis=1) @ q2
    return jax.nn.sigmoid(x[:, :OUT]), x[:, OUT:], logdet


# --------------------------- parameter construction ----------------------------
def make_perm_matrix(key, d):
    k1, k2 = jax.random.split(key)
    rows = jax.random.permutation(k1, d)
    cols = jax.random.permutation(k2, d)
    return jnp.zeros((d, d), jnp.float32).at[rows, cols].set(1.0)


def make_linear(key, n_in, n_out):
    kw, kb = jax.random.split(key)
    lim = 1.0 / (n_in ** 0.5)
    w = jax.random.uniform(kw, (n_in, n_out), jnp.float32, -lim, lim)
    b = jax.random.uniform(kb, (1, n_out), jnp.float32, -lim, lim)
    return w, b


def make_coupling_params(key, n_in, n_out):
    keys = jax.random.split(key, 5)
    p = []
    dims = [(n_in, HIDDEN), (HIDDEN, HIDDEN), (HIDDEN, HIDDEN),
            (HIDDEN, n_out), (HIDDEN, n_out)]
    for k, (i, o) in zip(keys, dims):
        w, b = make_linear(k, i, o)
        p += [w, b]
    return p  # [w0,b0,w1,b1,w2,b2,wS,bS,wT,bT]


if __name__ == "__main__":
    key = jax.random.PRNGKey(0)
    kx, kq1, kq2, ka, kb = jax.random.split(key, 5)

    x = jax.random.normal(kx, (B, D), jnp.float32)
    q1 = make_perm_matrix(kq1, D)
    q2 = make_perm_matrix(kq2, D)
    a_params = make_coupling_params(ka, SA, SB)   # CNa: Xa -> (logSa, Ta)
    b_params = make_coupling_params(kb, SB, SA)   # CNb: Xb -> (logSb, Tb)

    y, z, logdet = inn_forward(x, q1, q2, a_params, b_params)
    jax.block_until_ready((y, z, logdet))

    y_ref, z_ref, ld_ref = inn_reference(x, q1, q2, a_params, b_params)
    assert jnp.allclose(y, y_ref, atol=1e-4, rtol=1e-4)
    assert jnp.allclose(z, z_ref, atol=1e-4, rtol=1e-4)
    assert jnp.allclose(logdet, ld_ref, atol=1e-4, rtol=1e-4)

    print("KERNEL_OK")
</pallas_src>

<mosaic_0001>
module attributes {stable_mosaic.version = 11 : i64} {
  func.func @inn_kernel(%arg0: memref<16x16xf32, #tpu.memory_space<vmem>>, %arg1: memref<168x64xf32, #tpu.memory_space<vmem>>, %arg2: memref<176x16xf32, #tpu.memory_space<vmem>>, %arg3: memref<16x17xf32, #tpu.memory_space<vmem>>) attributes {dimension_semantics = [], scalar_prefetch = 0 : i64, scratch_operands = 0 : i64, tpu.core_type = #tpu.core_type<tc>} {
    %c0 = arith.constant 0 : index
    %c0_0 = arith.constant 0 : index
    %0 = vector.load %arg0[%c0, %c0_0] : memref<16x16xf32, #tpu.memory_space<vmem>>, vector<16x16xf32>
    %c0_1 = arith.constant 0 : index
    %c0_2 = arith.constant 0 : index
    %1 = vector.load %arg2[%c0_1, %c0_2] : memref<176x16xf32, #tpu.memory_space<vmem>>, vector<16x16xf32>
    %c16 = arith.constant 16 : index
    %c0_3 = arith.constant 0 : index
    %2 = vector.load %arg2[%c16, %c0_3] : memref<176x16xf32, #tpu.memory_space<vmem>>, vector<16x16xf32>
    %c32 = arith.constant 32 : index
    %c0_4 = arith.constant 0 : index
    %3 = vector.load %arg2[%c32, %c0_4] : memref<176x16xf32, #tpu.memory_space<vmem>>, vector<64x16xf32>
    %c96 = arith.constant 96 : index
    %c0_5 = arith.constant 0 : index
    %4 = vector.load %arg2[%c96, %c0_5] : memref<176x16xf32, #tpu.memory_space<vmem>>, vector<64x16xf32>
    %c160 = arith.constant 160 : index
    %c0_6 = arith.constant 0 : index
    %5 = vector.load %arg2[%c160, %c0_6] : memref<176x16xf32, #tpu.memory_space<vmem>>, vector<1x16xf32>
    %c168 = arith.constant 168 : index
    %c0_7 = arith.constant 0 : index
    %6 = vector.load %arg2[%c168, %c0_7] : memref<176x16xf32, #tpu.memory_space<vmem>>, vector<1x16xf32>
    %c0_8 = arith.constant 0 : index
    %c0_9 = arith.constant 0 : index
    %7 = vector.load %arg1[%c0_8, %c0_9] : memref<168x64xf32, #tpu.memory_space<vmem>>, vector<16x64xf32>
    %c16_10 = arith.constant 16 : index
    %c0_11 = arith.constant 0 : index
    %8 = vector.load %arg1[%c16_10, %c0_11] : memref<168x64xf32, #tpu.memory_space<vmem>>, vector<64x64xf32>
    %c80 = arith.constant 80 : index
    %c0_12 = arith.constant 0 : index
    %9 = vector.load %arg1[%c80, %c0_12] : memref<168x64xf32, #tpu.memory_space<vmem>>, vector<64x64xf32>
    %c144 = arith.constant 144 : index
    %c0_13 = arith.constant 0 : index
    %10 = vector.load %arg1[%c144, %c0_13] : memref<168x64xf32, #tpu.memory_space<vmem>>, vector<1x64xf32>
    %c152 = arith.constant 152 : index
    %c0_14 = arith.constant 0 : index
    %11 = vector.load %arg1[%c152, %c0_14] : memref<168x64xf32, #tpu.memory_space<vmem>>, vector<1x64xf32>
    %c160_15 = arith.constant 160 : index
    %c0_16 = arith.constant 0 : index
    %12 = vector.load %arg1[%c160_15, %c0_16] : memref<168x64xf32, #tpu.memory_space<vmem>>, vector<1x64xf32>
    %cst = arith.constant dense<0.000000e+00> : vector<16x16xf32>
    %13 = tpu.matmul %0, %1, %cst {dimension_numbers = #tpu.dot_dimension_numbers<[1], [0], [0], [1], [0, 0, 1, 1], [], []>} : vector<16x16xf32>, vector<16x16xf32>, vector<16x16xf32> -> vector<16x16xf32>
    %cst_17 = arith.constant dense<0.000000e+00> : vector<16x64xf32>
    %14 = tpu.matmul %13, %7, %cst_17 {dimension_numbers = #tpu.dot_dimension_numbers<[1], [0], [0], [1], [0, 0, 1, 1], [], []>} : vector<16x16xf32>, vector<16x64xf32>, vector<16x64xf32> -> vector<16x64xf32>
    %15 = vector.broadcast %10 : vector<1x64xf32> to vector<16x64xf32>
    %16 = arith.addf %14, %15 : vector<16x64xf32>
    %cst_18 = arith.constant 0.000000e+00 : f32
    %17 = vector.broadcast %cst_18 : f32 to vector<16x64xf32>
    %18 = arith.maximumf %16, %17 : vector<16x64xf32>
    %cst_19 = arith.constant dense<0.000000e+00> : vector<16x64xf32>
    %19 = tpu.matmul %18, %8, %cst_19 {dimension_numbers = #tpu.dot_dimension_numbers<[1], [0], [0], [1], [0, 0, 1, 1], [], []>} : vector<16x64xf32>, vector<64x64xf32>, vector<16x64xf32> -> vector<16x64xf32>
    %20 = vector.broadcast %11 : vector<1x64xf32> to vector<16x64xf32>
    %21 = arith.addf %19, %20 : vector<16x64xf32>
    %cst_20 = arith.constant 0.000000e+00 : f32
    %22 = vector.broadcast %cst_20 : f32 to vector<16x64xf32>
    %23 = arith.maximumf %21, %22 : vector<16x64xf32>
    %cst_21 = arith.constant dense<0.000000e+00> : vector<16x64xf32>
    %24 = tpu.matmul %23, %9, %cst_21 {dimension_numbers = #tpu.dot_dimension_numbers<[1], [0], [0], [1], [0, 0, 1, 1], [], []>} : vector<16x64xf32>, vector<64x64xf32>, vector<16x64xf32> -> vector<16x64xf32>
    %25 = vector.broadcast %12 : vector<1x64xf32> to vector<16x64xf32>
    %26 = arith.addf %24, %25 : vector<16x64xf32>
    %cst_22 = arith.constant 0.000000e+00 : f32
    %27 = vector.broadcast %cst_22 : f32 to vector<16x64xf32>
    %28 = arith.maximumf %26, %27 : vector<16x64xf32>
    %cst_23 = arith.constant dense<0.000000e+00> : vector<16x16xf32>
    %29 = tpu.matmul %28, %3, %cst_23 {dimension_numbers = #tpu.dot_dimension_numbers<[1], [0], [0], [1], [0, 0, 1, 1], [], []>} : vector<16x64xf32>, vector<64x16xf32>, vector<16x16xf32> -> vector<16x16xf32>
    %30 = vector.broadcast %5 : vector<1x16xf32> to vector<16x16xf32>
    %31 = arith.addf %29, %30 : vector<16x16xf32>
    %32 = math.tanh %31 : vector<16x16xf32>
    %cst_24 = arith.constant dense<0.000000e+00> : vector<16x16xf32>
    %33 = tpu.matmul %28, %4, %cst_24 {dimension_numbers = #tpu.dot_dimension_numbers<[1], [0], [0], [1], [0, 0, 1, 1], [], []>} : vector<16x64xf32>, vector<64x16xf32>, vector<16x16xf32> -> vector<16x16xf32>
    %34 = vector.broadcast %6 : vector<1x16xf32> to vector<16x16xf32>
    %35 = arith.addf %33, %34 : vector<16x16xf32>
    %36 = math.exp %32 : vector<16x16xf32>
    %37 = arith.mulf %13, %36 : vector<16x16xf32>
    %38 = arith.addf %37, %35 : vector<16x16xf32>
    %cst_25 = arith.constant dense<0.000000e+00> : vector<16xf32>
    %39 = vector.multi_reduction <add>, %32, %cst_25 [1] : vector<16x16xf32> to vector<16xf32>
    %40 = vector.shape_cast %39 : vector<16xf32> to vector<16x1xf32>
    %cst_26 = arith.constant dense<0.000000e+00> : vector<16x16xf32>
    %41 = tpu.matmul %38, %2, %cst_26 {dimension_numbers = #tpu.dot_dimension_numbers<[1], [0], [0], [1], [0, 0, 1, 1], [], []>} : vector<16x16xf32>, vector<16x16xf32>, vector<16x16xf32> -> vector<16x16xf32>
    %42 = tpu.iota {dimensions = array<i32: 1>} : vector<16x16xi32>
    %c8_i32 = arith.constant 8 : i32
    %43 = vector.broadcast %c8_i32 : i32 to vector<16x16xi32>
    %44 = arith.cmpi slt, %42, %43 : vector<16x16xi32>
    %45 = arith.negf %41 : vector<16x16xf32>
    %46 = math.exp %45 : vector<16x16xf32>
    %cst_27 = arith.constant 1.000000e+00 : f32
    %47 = vector.broadcast %cst_27 : f32 to vector<16x16xf32>
    %48 = arith.addf %47, %46 : vector<16x16xf32>
    %49 = arith.divf %47, %48 : vector<16x16xf32>
    %50 = arith.select %44, %49, %41 : vector<16x16xi1>, vector<16x16xf32>
    %c0_28 = arith.constant 0 : index
    %c0_29 = arith.constant 0 : index
    %51 = vector.load %arg3[%c0_28, %c0_29] : memref<16x17xf32, #tpu.memory_space<vmem>>, vector<16x16xf32>
    tpu.vector_store %arg3[%c0_28, %c0_29], %50 {strides = array<i32>} : memref<16x17xf32, #tpu.memory_space<vmem>>, vector<16x16xf32>,
    %c0_30 = arith.constant 0 : index
    %c16_31 = arith.constant 16 : index
    %52 = vector.load %arg3[%c0_30, %c16_31] : memref<16x17xf32, #tpu.memory_space<vmem>>, vector<16x1xf32>
    tpu.vector_store %arg3[%c0_30, %c16_31], %40 {strides = array<i32>} : memref<16x17xf32, #tpu.memory_space<vmem>>, vector<16x1xf32>,
    return
  }
}

</mosaic_0001>

<bundles_post_ra>
// kernel: tpu_custom_call.1
= control target key start
LH: loop header
LB: loop body
LE: loop exit
PB: predicated region body
PF: predicated region fallthrough
CT: control target
= control target key end

     0   :  { %vm60_vm0 = vcmask 130048   ;;  %s1188_s0 = inlined_call_operand.vmem [shape: f32[16,16], index: 0, kind: input, shape index: {}]   ;;  %s1189_s1 = inlined_call_operand.vmem [shape: f32[168,64], index: 1, kind: input, shape index: {}]   ;;  %s1190_s2 = inlined_call_operand.vmem [shape: f32[176,16], index: 2, kind: input, shape index: {}]   ;;  %s1191_s3 = inlined_call_operand.hbm [shape: f32[16,17], index: 3, kind: output, shape index: {}]  }
   0x1   :  { %v17_v0 = vld [vmem:[%s1190_s2] sm:$0xff]  ;;  %v18_v1 = vld [vmem:[%s1190_s2 + $0x8] sm:$0xff] }
   0x2   :  { %v15_v2 = vld [vmem:[%s1188_s0] sm:$0xff]  ;;  %v873_v3 = vpack.c.bf16 %v18_v1, %v17_v0  ;;  %v40_v5 = vld [vmem:[%s1189_s1 + $0x8] sm:$0xff] }
   0x3   :  { %780 = vmatprep.mubr.msk.f32.mxu0 %vm60_vm0, %v15_v2  ;;  %v39_v4 = vld [vmem:[%s1189_s1] sm:$0xff] }
   0x4   :  { %v877_v6 = vpack.c.bf16 %v40_v5, %v39_v4 }
   0x5   :  { %8 = vsyncpa [#allocation3], 0  ;;  %874 = vmatprep.subr.bf16.mxu0 %v873_v3  ;;  %v16_v7 = vld [vmem:[%s1188_s0 + $0x8] sm:$0xff]  ;;  %v41_v8 = vld [vmem:[%s1189_s1 + $0x10] sm:$0xff]  ;;  %vm233_vm1 = vcmask 523264   ;;  %vm684_vm3 = vcmask 138368  }
   0x6   :  { %876 = vmatpush3.bf16.msra.mxu0 %v873_v3  ;;  %878 = vmatprep.subr.bf16.mxu1 %v877_v6  ;;  %v42_v9 = vld [vmem:[%s1189_s1 + $0x18] sm:$0xff]  ;;  %v43_v10 = vld [vmem:[%s1189_s1 + $0x20] sm:$0xff]  ;;  %v44_v12 = vld [vmem:[%s1189_s1 + $0x28] sm:$0xff] }
   0x7   :  { %880 = vmatpush3.bf16.msra.mxu1 %v877_v6  ;;  %v881_v11 = vpack.c.bf16 %v42_v9, %v41_v8  ;;  %v885_v13 = vpack.c.bf16 %v44_v12, %v43_v10  ;;  %v45_v14 = vld [vmem:[%s1189_s1 + $0x30] sm:$0xff]  ;;  %v46_v15 = vld [vmem:[%s1189_s1 + $0x38] sm:$0xff]  ;;  %v47_v19 = vld [vmem:[%s1189_s1 + $0x40] sm:$0xff] }
   0x8   :  { %v889_v16 = vpack.c.bf16 %v46_v15, %v45_v14  ;;  %v48_v20 = vld [vmem:[%s1189_s1 + $0x48] sm:$0xff]  ;;  %v49_v22 = vld [vmem:[%s1189_s1 + $0x50] sm:$0xff]  ;;  %v50_v23 = vld [vmem:[%s1189_s1 + $0x58] sm:$0xff] }
   0x9   :  { %781 = vmatmul.mubr.msk.f32.vlgmr.msra.gmra.mrb[0].mxu0 %vm60_vm0, %v16_v7  ;;  %882 = vmatprep.subr.bf16.mxu0 %v881_v11  ;;  %v893_v21 = vpack.c.bf16 %v48_v20, %v47_v19  ;;  %v51_v24 = vld [vmem:[%s1189_s1 + $0x60] sm:$0xff]  ;;  %v897_v25 = vpack.c.bf16 %v50_v23, %v49_v22  ;;  %v52_v26 = vld [vmem:[%s1189_s1 + $0x68] sm:$0xff]  ;;  %v53_v28 = vld [vmem:[%s1189_s1 + $0x70] sm:$0xff] }
   0xa   :  { %884 = vmatpush3.bf16.msra.mxu0 %v881_v11  ;;  %v901_v27 = vpack.c.bf16 %v52_v26, %v51_v24  ;;  %v54_v29 = vld [vmem:[%s1189_s1 + $0x78] sm:$0xff]  ;;  %v705_v31 = vld [vmem:[%s1189_s1 + $0x90] ss:$0 sm:$0xff]  ;;  %v55_v38 = vld [vmem:[%s1189_s1 + $0x80] sm:$0xff] }
   0xb   :  { %886 = vmatprep.subr.bf16.mxu0 %v885_v13  ;;  %898 = vmatprep.subr.bf16.mxu1 %v897_v25  ;;  %v905_v30 = vpack.c.bf16 %v54_v29, %v53_v28  ;;  %v56_v39 = vld [vmem:[%s1189_s1 + $0x88] sm:$0xff]  ;;  %v21_v41 = vld [vmem:[%s1190_s2 + $0x20] sm:$0xff]  ;;  %v23_v46 = vld [vmem:[%s1190_s2 + $0x30] sm:$0xff] }
   0xc   :  { %v909_v40 = vpack.c.bf16 %v56_v39, %v55_v38  ;;  %v22_v42 = vld [vmem:[%s1190_s2 + $0x28] sm:$0xff]  ;;  %v29_v43 = vld [vmem:[%s1190_s2 + $0x60] sm:$0xff]  ;;  %v24_v47 = vld [vmem:[%s1190_s2 + $0x38] sm:$0xff] }
   0xd   :  { %v913_v44 = vpack.c.bf16 %v22_v42, %v21_v41  ;;  %v30_v45 = vld [vmem:[%s1190_s2 + $0x68] sm:$0xff]  ;;  %v917_v49 = vpack.c.bf16 %v24_v47, %v23_v46  ;;  %v25_v50 = vld [vmem:[%s1190_s2 + $0x40] sm:$0xff]  ;;  %v708_v53 = vld [vmem:[%s1189_s1 + $0x98] ss:$0 sm:$0xff] }
   0xe   :  { %888 = vmatpush3.bf16.msra.mxu0 %v885_v13  ;;  %v929_v48 = vpack.c.bf16 %v30_v45, %v29_v43  ;;  %v26_v51 = vld [vmem:[%s1190_s2 + $0x48] sm:$0xff]  ;;  %v31_v58 = vld [vmem:[%s1190_s2 + $0x70] sm:$0xff]  ;;  %v32_v59 = vld [vmem:[%s1190_s2 + $0x78] sm:$0xff] }
   0xf   :  { %890 = vmatprep.subr.bf16.mxu0 %v889_v16  ;;  %v921_v52 = vpack.c.bf16 %v26_v51, %v25_v50  ;;  %v933_v62 = vpack.c.bf16 %v32_v59, %v31_v58  ;;  %v33_v63 = vld [vmem:[%s1190_s2 + $0x80] sm:$0xff]  ;;  %v34_v0 = vld [vmem:[%s1190_s2 + $0x88] sm:$0xff]  ;;  %v27_v2 = vld [vmem:[%s1190_s2 + $0x50] sm:$0xff] }
  0x10   :  { %v937_v1 = vpack.c.bf16 %v34_v0, %v33_v63  ;;  %v28_v3 = vld [vmem:[%s1190_s2 + $0x58] sm:$0xff]  ;;  %v35_v5 = vld [vmem:[%s1190_s2 + $0x90] sm:$0xff]  ;;  %v711_v8 = vld [vmem:[%s1189_s1 + $0xa0] ss:$0 sm:$0xff] }
  0x11   :  { %v925_v4 = vpack.c.bf16 %v28_v3, %v27_v2  ;;  %v36_v6 = vld [vmem:[%s1190_s2 + $0x98] sm:$0xff]  ;;  %v19_v15 = vld [vmem:[%s1190_s2 + $0x10] sm:$0xff]  ;;  %v714_v20 = vld [vmem:[%s1190_s2 + $0xa0] ss:$0 sm:$0xff] }
  0x12   :  { %892 = vmatpush3.bf16.msra.mxu0 %v889_v16  ;;  %v941_v7 = vpack.c.bf16 %v36_v6, %v35_v5  ;;  %v20_v16 = vld [vmem:[%s1190_s2 + $0x18] sm:$0xff] }
  0x13   :  { %894 = vmatprep.subr.bf16.mxu0 %v893_v21  ;;  %v945_v19 = vpack.c.bf16 %v20_v16, %v19_v15 }
  0x16   :  { %896 = vmatpush3.bf16.msra.mxu0 %v893_v21 }
  0x17   :  { %914 = vmatprep.subr.bf16.mxu0 %v913_v44 }
  0xdc   :  { %v1053_v17 = vpop.f32.mrb[0].mxu0 }
  0xdd   :  { %v1055_v18 = vpop.f32.mrb[1].mxu0 }
  0xde   :  { %787 = vmatprep.mubr.msk.f32.mxu1 %vm60_vm0, %v1055_v18 }
  0xdf   :  { %788 = vmatmul.mubr.msk.f32.vlgmr.msra.gmra.mrb[0].mxu1 %vm60_vm0, %v1053_v17 }
  0xe0   :  { %900 = vmatpush3.bf16.msra.mxu1 %v897_v25 }
  0xe1   :  { %902 = vmatprep.subr.bf16.mxu1 %v901_v27 }
  0xe4   :  { %904 = vmatpush3.bf16.msra.mxu1 %v901_v27 }
  0xe5   :  { %906 = vmatprep.subr.bf16.mxu1 %v905_v30 }
  0xe8   :  { %908 = vmatpush3.bf16.msra.mxu1 %v905_v30 }
  0xe9   :  { %910 = vmatprep.subr.bf16.mxu1 %v909_v40 }
  0xec   :  { %912 = vmatpush3.bf16.msra.mxu1 %v909_v40 }
  0xed   :  { %930 = vmatprep.subr.bf16.mxu1 %v929_v48 }
 0x1b2   :  { %v789_v32 = vpop.f32.mrb[0].mxu1 }
 0x1b3   :  { %v224_v33 = vadd.f32 %v789_v32, %v705_v31  ;;  %v218_v34 = vpop.f32.mrb[1].mxu1 }
 0x1b4   :  { %v219_v35 = vadd.f32 %v705_v31, %v218_v34 }
 0x1b5   :  { %v228_v37 = vmax.f32 %v224_v33, 0.0  ;;  %v717_v33 = vld [vmem:[%s1190_s2 + $0xa8] ss:$0 sm:$0xff]  ;;  %s992_s2 = smov [#allocation2]  }
 0x1b6   :  { %v227_v36 = vmax.f32 %v219_v35, 0.0  ;;  %s692_s17 = sshll.u32 %s992_s2, 4  ;;  %s693_s17 = int_to_ptr.vmem [resolvable:$true] %s692_s17 }
 0x1b7   :  { %s968_s18 = scalar_lea.vmem %s693_s17, 256  ;;  %p973_p1 = scmp.lt.s32.totalorder %s693_s17, %s693_s17 }
 0x1b8   :  { %806 = vmatprep.mubr.msk.f32.mxu0 %vm233_vm1, %v227_v36  ;;  %p969_p0 = scmp.ne.s32.totalorder %s693_s17, %s968_s18  ;;  %p974_p2 = scmp.lt.s32.totalorder %s968_s18, %s968_s18 }
 0x1b9   :  { %807 = vmatmul.mubr.msk.f32.vlgmr.msra.gmra.mrb[2].mxu0 %vm233_vm1, %v228_v37 }
 0x1ba   :  { %916 = vmatpush3.bf16.msra.mxu0 %v913_v44  ;;  %p975_p3 = por %p974_p2, %p973_p1 }
 0x1bb   :  { %918 = vmatprep.subr.bf16.mxu0 %v917_v49 }
 0x1bc   :  { %p976_p4 = pnand %p975_p3, %p969_p0 }
 0x1be   :  { %920 = vmatpush3.bf16.msra.mxu0 %v917_v49 }
 0x1bf   :  { %922 = vmatprep.subr.bf16.mxu0 %v921_v52 }
 0x1c2   :  { %924 = vmatpush3.bf16.msra.mxu0 %v921_v52 }
 0x1c3   :  { %926 = vmatprep.subr.bf16.mxu0 %v925_v4 }
 0x1c6   :  { %928 = vmatpush3.bf16.msra.mxu0 %v925_v4 }
 0x1c7   :  { %946 = vmatprep.subr.bf16.mxu0 %v945_v19 }
 0x28c   :  { %v808_v54 = vpop.f32.mrb[2].mxu0 }
 0x28d   :  { %v312_v55 = vadd.f32 %v808_v54, %v708_v53  ;;  %v306_v56 = vpop.f32.mrb[3].mxu0 }
 0x28e   :  { %v307_v57 = vadd.f32 %v708_v53, %v306_v56 }
 0x28f   :  { %v316_v61 = vmax.f32 %v312_v55, 0.0 }
 0x290   :  { %v315_v60 = vmax.f32 %v307_v57, 0.0 }
 0x292   :  { %825 = vmatprep.mubr.msk.f32.mxu1 %vm233_vm1, %v315_v60 }
 0x293   :  { %826 = vmatmul.mubr.msk.f32.vlgmr.msra.gmra.mrb[2].mxu1 %vm233_vm1, %v316_v61 }
 0x294   :  { %932 = vmatpush3.bf16.msra.mxu1 %v929_v48 }
 0x295   :  { %934 = vmatprep.subr.bf16.mxu1 %v933_v62 }
 0x298   :  { %936 = vmatpush3.bf16.msra.mxu1 %v933_v62 }
 0x299   :  { %938 = vmatprep.subr.bf16.mxu1 %v937_v1 }
 0x29c   :  { %940 = vmatpush3.bf16.msra.mxu1 %v937_v1 }
 0x29d   :  { %942 = vmatprep.subr.bf16.mxu1 %v941_v7 }
 0x2a0   :  { %944 = vmatpush3.bf16.msra.mxu1 %v941_v7 }
 0x366   :  { %v827_v9 = vpop.f32.mrb[2].mxu1 }
 0x367   :  { %v399_v10 = vadd.f32 %v827_v9, %v711_v8  ;;  %v393_v11 = vpop.f32.mrb[3].mxu1 }
 0x368   :  { %v394_v12 = vadd.f32 %v711_v8, %v393_v11 }
 0x369   :  { %v403_v14 = vmax.f32 %v399_v10, 0.0 }
 0x36a   :  { %v402_v13 = vmax.f32 %v394_v12, 0.0 }
 0x36c   :  { %844 = vmatprep.mubr.msk.f32.mxu0 %vm233_vm1, %v402_v13  ;;  %863 = vmatprep.mubr.msk.f32.mxu1 %vm233_vm1, %v402_v13 }
 0x36d   :  { %845 = vmatmul.mubr.msk.f32.vlgmr.msra.gmra.mrb[4].mxu0 %vm233_vm1, %v403_v14  ;;  %864 = vmatmul.mubr.msk.f32.vlgmr.msra.gmra.mrb[4].mxu1 %vm233_vm1, %v403_v14 }
 0x36e   :  { %948 = vmatpush3.bf16.msra.mxu0 %v945_v19 }
 0x440   :  { %v846_v21 = vpop.f32.mrb[4].mxu0  ;;  %v865_v22 = vpop.f32.mrb[4].mxu1 }
 0x441   :  { %v486_v23 = vadd.f32 %v846_v21, %v714_v20  ;;  %v480_v24 = vpop.f32.mrb[5].mxu0  ;;  %v561_v25 = vpop.f32.mrb[5].mxu1  ;;  %v567_v36 = vadd.f32 %v865_v22, %v717_v33 }
 0x442   :  { %v481_v26 = vadd.f32 %v714_v20, %v480_v24  ;;  %v562_v38 = vadd.f32 %v717_v33, %v561_v25 }
 0x443   :  { %952 = vtanh.f32 %v486_v23 }
 0x444   :  { %954 = vtanh.f32 %v481_v26 }
 0x44d   :  { %v953_v27 = vpop.eup %952 }
 0x44e   :  { %v955_v28 = vpop.eup %954  ;;  %v572_v29 = vmul.f32 1.442695, %v953_v27  ;;  %v581_v32 = vsel %vm60_vm0, %v953_v27, 0.0 }
 0x44f   :  { %v570_v30 = vmul.f32 1.442695, %v955_v28  ;;  %v578_v31 = vsel %vm60_vm0, %v955_v28, 0.0 }
 0x450   :  { %956 = vpow2.f32 %v572_v29  ;;  %579 = vadd.xlane.f32.xlu0 %v578_v31 }
 0x451   :  { %958 = vpow2.f32 %v570_v30 }
 0x454   :  { %582 = vadd.xlane.f32.xlu0 %v581_v32 }
 0x45a   :  { %v957_v34 = vpop.eup %956 }
 0x45b   :  { %v959_v35 = vpop.eup %958  ;;  %v575_v37 = vmul.f32 %v957_v34, %v1053_v17  ;;  %v665_v17 = vlaneseq }
 0x45c   :  { %v574_v39 = vmul.f32 %v959_v35, %v1055_v18 }
 0x45d   :  { %v577_v40 = vadd.f32 %v575_v37, %v567_v36  ;;  %v666_v18 = vand.u32 127, %v665_v17 }
 0x45e   :  { %v576_v41 = vadd.f32 %v574_v39, %v562_v38 }
 0x45f   :  { %vm667_vm2 = vcmp.lt.s32.totalorder %v666_v18, 8 }
 0x460   :  { %870 = vmatprep.mubr.msk.f32.mxu0 %vm60_vm0, %v576_v41 }
 0x461   :  { %871 = vmatmul.mubr.msk.f32.vlgmr.msra.gmra.mrb[6].mxu0 %vm60_vm0, %v577_v40 }
 0x4dd   :  { %v580_v50 = vpop.xlane.xlu0 %579 }
 0x4e1   :  { %v583_v54 = vpop.xlane.xlu0 %582 }
 0x534   :  { %v872_v42 = vpop.f32.mrb[6].mxu0 }
 0x535   :  { %v723_v43 = vmul.f32 -1.442695, %v872_v42  ;;  %v656_v44 = vpop.f32.mrb[7].mxu0 }
 0x536   :  { %v722_v45 = vmul.f32 -1.442695, %v656_v44 }
 0x537   :  { %960 = vpow2.f32 %v723_v43 }
 0x538   :  { %962 = vpow2.f32 %v722_v45 }
 0x541   :  { %v961_v46 = vpop.eup %960 }
 0x542   :  { %v963_v47 = vpop.eup %962  ;;  %v675_v48 = vadd.f32 1.0, %v961_v46 }
 0x543   :  { %v674_v49 = vadd.f32 1.0, %v963_v47 }
 0x544   :  { %964 = vrcp.f32 %v675_v48 }
 0x545   :  { %966 = vrcp.f32 %v674_v49 }
 0x54e   :  { %v965_v51 = vpop.eup %964 }
 0x54f   :  { %v967_v52 = vpop.eup %966  ;;  %v681_v53 = vsel %vm667_vm2, %v965_v51, %v872_v42 }
 0x550   :  { %683 = vst.msk [vmem:[#allocation2 + $0x8] sm:$0xff] %vm60_vm0, %v681_v53  ;;  %v680_v55 = vsel %vm667_vm2, %v967_v52, %v656_v44 }
 0x551   :  { %686 = vst.msk [vmem:[#allocation2 + $0x8] sm:$0xff] %vm684_vm3, %v583_v54 }
 0x552   :  { %682 = vst.msk [vmem:[#allocation2] sm:$0xff] %vm60_vm0, %v680_v55 }
 0x553   :  { %685 = vst.msk [vmem:[#allocation2] sm:$0xff] %vm684_vm3, %v580_v50 }
 0x554   :  { %979 = shalt.err (!%p976_p4)
}
 0x555   :  { %s980_s21 = scalar_lea.hbm %s1191_s3, 256 }
 0x556   :  { %p981_p5 = scmp.ne.s32.totalorder %s1191_s3, %s980_s21  ;;  %p984_p6 = scmp.lt.u32.totalorder %s980_s21, %s1191_s3 }
 0x558   :  { %p986_p7 = pnand %p984_p6, %p981_p5 }
 0x55a   :  { %989 = shalt.err (!%p986_p7)
}
 0x55b   :  { %s993_s26 = smov 128   ;;  %s994_s27 = smov 8  }
 0x55c   :  { %698 = dma.vmem_to_hbm [thread:$0]  %s693_s17, 256, %s1191_s3, [#allocation3], %s993_s26, %s993_s26, %s994_s27  }
 0x55d   :  { %990 = dma.done.wait [#allocation3], 256  }
 0x55e   :  { %991 = vsyncadd [#allocation3], 4294967040 }
 0x55f   :  { %702 = vsyncpa [#allocation3], 1 }

</bundles_post_ra>
